<compile_context>
chip_gen: v7x
topology: tpu7x:2x2x1
jax: 0.10.0
libtpu: 0.0.40
codegen_flags: <defaults>
</compile_context>

<pallas_src>
import jax
import jax.numpy as jnp
from jax import lax
from jax.experimental import pallas as pl
from jax.experimental.pallas import tpu as pltpu


def _choose_time_tile(B, C, Ts, itemsize, budget_bytes, time_tile=None):
    """Pick a lane-dense time tile that fits the VMEM budget."""
    if time_tile is not None:
        if time_tile >= Ts:
            return Ts                      # single full block — always legal
        assert time_tile % 128 == 0, "forced time_tile must be a multiple of 128"
        return time_tile
    # Per-time-sample VMEM bytes:
    #   band + hr inputs, double-buffered, at native dtype
    #   f32 accumulator scratch
    #   ~2x band-tile of live f32 temps (upcast + |a-b|)
    bytes_per_t = (2 * B * C + 2 * B) * itemsize + B * C * 4 + 2 * B * C * 4
    t_budget = max(128, budget_bytes // bytes_per_t)
    if Ts <= t_budget:
        return Ts                          # one full block, no masking needed
    return max(128, (t_budget // 128) * 128)   # lane-aligned; tail masked


def _make_l1_band_kernel(B, C, Ts, T_tile):
    inv_count = 1.0 / float(B * C * Ts)
    needs_mask = (Ts % T_tile) != 0

    def kernel(hr_ref, band_ref, o_ref, acc_ref):
        t = pl.program_id(0)

        @pl.when(t == 0)
        def _():
            acc_ref[...] = jnp.zeros_like(acc_ref)

        a = hr_ref[...].astype(jnp.float32)        # (B, T_tile)
        b = band_ref[...].astype(jnp.float32)      # (B, C, T_tile)
        d = jnp.abs(a[:, None, :] - b)             # broadcast hr over channels
        if needs_mask:                             # ragged last time tile
            lane = lax.broadcasted_iota(jnp.int32, (B, C, T_tile), 2)
            valid = (t * T_tile + lane) < Ts
            d = jnp.where(valid, d, 0.0)
        acc_ref[...] += d                          # pure VPU add per step

        @pl.when(t == pl.num_programs(0) - 1)
        def _():
            # full cross-lane/sublane reduce + divide only once, at the end
            o_ref[0, 0] = jnp.sum(acc_ref[...]) * inv_count

    return kernel


def l1_band(hr_sub, band, *, vmem_budget_bytes=16 << 20, time_tile=None):
    """Mean absolute error between hr_sub (B, Ts) broadcast over C and band (B, C, Ts)."""
    B, Ts = hr_sub.shape
    Bb, C, Tsb = band.shape
    assert Bb == B and Tsb == Ts, "band / hr subsample shape mismatch"

    itemsize = max(jnp.dtype(band.dtype).itemsize, jnp.dtype(hr_sub.dtype).itemsize)
    T_tile = _choose_time_tile(B, C, Ts, itemsize, vmem_budget_bytes, time_tile)
    n_t = pl.cdiv(Ts, T_tile)

    kernel = _make_l1_band_kernel(B, C, Ts, T_tile)

    res = pl.pallas_call(
        kernel,
        out_shape=jax.ShapeDtypeStruct((1, 1), jnp.float32),
        grid_spec=pltpu.PrefetchScalarGridSpec(
            num_scalar_prefetch=0,
            grid=(n_t,),
            in_specs=[
                pl.BlockSpec((B, T_tile), lambda t: (0, t)),
                pl.BlockSpec((B, C, T_tile), lambda t: (0, 0, t)),
            ],
            out_specs=pl.BlockSpec((1, 1), lambda t: (0, 0),
                                   memory_space=pltpu.SMEM),
            scratch_shapes=[pltpu.VMEM((B, C, T_tile), jnp.float32)],
        ),
        compiler_params=pltpu.CompilerParams(
            dimension_semantics=("arbitrary",),   # time axis is a reduction
            vmem_limit_bytes=48 << 20,            # > v5e/v6e defaults, < v7x 64 MiB
        ),
    )(hr_sub, band)
    return res[0, 0]


class PyramidLossSubsample:
    """JAX/Pallas port of PyramidLoss with args.experiment.pyramid_loss == 'subsample'.

    forward(pr_signals, hr):
      hr:          (B, 1, T)   ground-truth high-rate signal
      pr_signals:  {'low_pass': (B, C, Ts0), 'high_pass': [(B, C, Tsi), ...]}
    returns {'pyramid_loss_i': scalar} for each band i.
    """

    def __init__(self, out_channels, *, vmem_budget_bytes=16 << 20, time_tile=None):
        self.out_channels = out_channels
        self.vmem_budget_bytes = vmem_budget_bytes
        self.time_tile = time_tile

    def __call__(self, pr_signals, hr):
        B, one, T = hr.shape
        assert one == 1
        C = self.out_channels

        band_bank = [pr_signals['low_pass']] + list(pr_signals['high_pass'])
        hop = len(band_bank)

        out = {}
        for i, band in enumerate(band_bank):
            # torch: hr.repeat((1, C, 1))[..., i::hop]  -> we only slice hr once
            # (B, Ts_i) and broadcast over C inside the kernel.
            hr_sub_i = hr[:, 0, i::hop]
            assert band.shape == (B, C, hr_sub_i.shape[-1]), (
                f"band {i} shape {band.shape} does not match hr[..., {i}::{hop}]")
            out[f'pyramid_loss_{i}'] = l1_band(
                hr_sub_i, band,
                vmem_budget_bytes=self.vmem_budget_bytes,
                time_tile=self.time_tile)
        return out


if __name__ == "__main__":
    key = jax.random.PRNGKey(0)
    B, C = 2, 4
    hop = 3
    T = 1150                        # NOT divisible by hop: exercises ragged tails
    Ts = [len(range(i, T, hop)) for i in range(hop)]   # [384, 383, 383]

    keys = jax.random.split(key, 1 + hop)
    hr = jax.random.normal(keys[0], (B, 1, T), dtype=jnp.float32)
    pr_signals = {
        'low_pass': jax.random.normal(keys[1], (B, C, Ts[0]), dtype=jnp.float32),
        'high_pass': [
            jax.random.normal(keys[2], (B, C, Ts[1]), dtype=jnp.float32),
            jax.random.normal(keys[3], (B, C, Ts[2]), dtype=jnp.float32),
        ],
    }

    # pure-JAX reference (mirrors the torch module exactly)
    hr_rep = jnp.tile(hr, (1, C, 1))
    band_bank = [pr_signals['low_pass']] + pr_signals['high_pass']
    refs = [jnp.mean(jnp.abs(hr_rep[..., i::hop] - band_bank[i])) for i in range(hop)]

    ok = True
    # Config 1: auto tile (single full block per band at these small shapes).
    out_auto = PyramidLossSubsample(out_channels=C)(pr_signals, hr)
    out_auto = jax.tree_util.tree_map(jax.block_until_ready, out_auto)
    # Config 2: forced 128-lane tiles -> multi-step grid, accumulator + tail mask.
    out_tiled = PyramidLossSubsample(out_channels=C, time_tile=128)(pr_signals, hr)
    out_tiled = jax.tree_util.tree_map(jax.block_until_ready, out_tiled)

    for i in range(hop):
        ok = ok and bool(jnp.allclose(out_auto[f'pyramid_loss_{i}'], refs[i],
                                      rtol=1e-5, atol=1e-5))
        ok = ok and bool(jnp.allclose(out_tiled[f'pyramid_loss_{i}'], refs[i],
                                      rtol=1e-5, atol=1e-5))

    if not ok:
        raise AssertionError("Pallas result mismatch vs JAX reference")

    print("KERNEL_OK")
</pallas_src>

<mosaic_0001>
module attributes {stable_mosaic.version = 11 : i64} {
  func.func @kernel(%arg0: i32, %arg1: memref<2x384xf32, #tpu.memory_space<vmem>>, %arg2: memref<2x4x384xf32, #tpu.memory_space<vmem>>, %arg3: memref<1x1xf32, #tpu.memory_space<smem>>, %arg4: memref<2x4x384xf32, #tpu.memory_space<vmem>>) attributes {dimension_semantics = [#tpu.dimension_semantics<arbitrary>], iteration_bounds = array<i64: 1>, scalar_prefetch = 0 : i64, scratch_operands = 1 : i64, tpu.core_type = #tpu.core_type<tc>, window_params = [{transform_indices = @transform_0, window_bounds = array<i64: 2, 384>}, {transform_indices = @transform_1, window_bounds = array<i64: 2, 4, 384>}, {transform_indices = @transform_2, window_bounds = array<i64: 1, 1>}]} {
    %c0_i32 = arith.constant 0 : i32
    %0 = arith.cmpi eq, %arg0, %c0_i32 : i32
    %1 = arith.extui %0 : i1 to i32
    %c0_i32_0 = arith.constant 0 : i32
    %2 = arith.cmpi ne, %1, %c0_i32_0 : i32
    scf.if %2 {
      %cst = arith.constant 0.000000e+00 : f32
      %15 = vector.broadcast %cst : f32 to vector<2x4x384xf32>
      %c0_13 = arith.constant 0 : index
      %c0_14 = arith.constant 0 : index
      %c0_15 = arith.constant 0 : index
      %16 = vector.load %arg4[%c0_13, %c0_14, %c0_15] : memref<2x4x384xf32, #tpu.memory_space<vmem>>, vector<2x4x384xf32>
      tpu.vector_store %arg4[%c0_13, %c0_14, %c0_15], %15 {strides = array<i32>} : memref<2x4x384xf32, #tpu.memory_space<vmem>>, vector<2x4x384xf32>,
    } else {
    }
    %c0 = arith.constant 0 : index
    %c0_1 = arith.constant 0 : index
    %3 = vector.load %arg1[%c0, %c0_1] : memref<2x384xf32, #tpu.memory_space<vmem>>, vector<2x384xf32>
    %c0_2 = arith.constant 0 : index
    %c0_3 = arith.constant 0 : index
    %c0_4 = arith.constant 0 : index
    %4 = vector.load %arg2[%c0_2, %c0_3, %c0_4] : memref<2x4x384xf32, #tpu.memory_space<vmem>>, vector<2x4x384xf32>
    %5 = vector.shape_cast %3 : vector<2x384xf32> to vector<2x1x384xf32>
    %6 = vector.broadcast %5 : vector<2x1x384xf32> to vector<2x4x384xf32>
    %7 = arith.subf %6, %4 : vector<2x4x384xf32>
    %8 = math.absf %7 : vector<2x4x384xf32>
    %c0_5 = arith.constant 0 : index
    %c0_6 = arith.constant 0 : index
    %c0_7 = arith.constant 0 : index
    %9 = vector.load %arg4[%c0_5, %c0_6, %c0_7] : memref<2x4x384xf32, #tpu.memory_space<vmem>>, vector<2x4x384xf32>
    %10 = arith.addf %9, %8 : vector<2x4x384xf32>
    %c0_8 = arith.constant 0 : index
    %c0_9 = arith.constant 0 : index
    %c0_10 = arith.constant 0 : index
    %11 = vector.load %arg4[%c0_8, %c0_9, %c0_10] : memref<2x4x384xf32, #tpu.memory_space<vmem>>, vector<2x4x384xf32>
    tpu.vector_store %arg4[%c0_8, %c0_9, %c0_10], %10 {strides = array<i32>} : memref<2x4x384xf32, #tpu.memory_space<vmem>>, vector<2x4x384xf32>,
    %c0_i32_11 = arith.constant 0 : i32
    %12 = arith.cmpi eq, %arg0, %c0_i32_11 : i32
    %13 = arith.extui %12 : i1 to i32
    %c0_i32_12 = arith.constant 0 : i32
    %14 = arith.cmpi ne, %13, %c0_i32_12 : i32
    scf.if %14 {
      %c0_13 = arith.constant 0 : index
      %c0_14 = arith.constant 0 : index
      %c0_15 = arith.constant 0 : index
      %15 = vector.load %arg4[%c0_13, %c0_14, %c0_15] : memref<2x4x384xf32, #tpu.memory_space<vmem>>, vector<2x4x384xf32>
      %16 = vector.shape_cast %15 : vector<2x4x384xf32> to vector<1x2x4x384xf32>
      %cst = arith.constant dense<0.000000e+00> : vector<1xf32>
      %17 = vector.multi_reduction <add>, %16, %cst [1, 2, 3] : vector<1x2x4x384xf32> to vector<1xf32>
      %18 = vector.shape_cast %17 : vector<1xf32> to vector<1x1x1x1xf32>
      %19 = vector.extract %18[0, 0, 0, 0] : f32 from vector<1x1x1x1xf32>
      %cst_16 = arith.constant 3.25520843E-4 : f32
      %20 = arith.mulf %19, %cst_16 : f32
      %c0_17 = arith.constant 0 : index
      %c0_18 = arith.constant 0 : index
      %21 = memref.load %arg3[%c0_17, %c0_18] : memref<1x1xf32, #tpu.memory_space<smem>>
      memref.store %20, %arg3[%c0_17, %c0_18] : memref<1x1xf32, #tpu.memory_space<smem>>
    } else {
    }
    return
  }
  func.func @transform_0(%arg0: i32) -> (i32, i32) {
    %c0_i32 = arith.constant 0 : i32
    %c0_i32_0 = arith.constant 0 : i32
    return %c0_i32, %arg0 : i32, i32
  }
  func.func @transform_1(%arg0: i32) -> (i32, i32, i32) {
    %c0_i32 = arith.constant 0 : i32
    %c0_i32_0 = arith.constant 0 : i32
    %c0_i32_1 = arith.constant 0 : i32
    return %c0_i32, %c0_i32_0, %arg0 : i32, i32, i32
  }
  func.func @transform_2(%arg0: i32) -> (i32, i32) {
    %c0_i32 = arith.constant 0 : i32
    %c0_i32_0 = arith.constant 0 : i32
    %c0_i32_1 = arith.constant 0 : i32
    return %c0_i32, %c0_i32_0 : i32, i32
  }
}

</mosaic_0001>

<bundles_post_ra>
// kernel: tpu_custom_call.1
= control target key start
LH: loop header
LB: loop body
LE: loop exit
PB: predicated region body
PF: predicated region fallthrough
CT: control target
= control target key end

     0   :  { %7 = vsyncpa [#allocation4], 0  ;;  %s317_s0 = inlined_call_operand.hbm [shape: f32[2,384], index: 0, kind: input, shape index: {}]   ;;  %s318_s1 = inlined_call_operand.hbm [shape: f32[2,4,384], index: 1, kind: input, shape index: {}]   ;;  %s319_s2 = inlined_call_operand.hbm [shape: f32[1,1], index: 2, kind: output, shape index: {}]  }
   0x1   :  { %8 = vsyncpa [#allocation7], 0 }
   0x2   :  { %9 = vsyncpa [#allocation5], 0  ;;  %s253_s9 = smov [#allocation3]   ;;  %s254_s11 = smov [#allocation6]  }
   0x3   :  { %s16_s10 = sshll.u32 %s253_s9, 4  ;;  %s25_s12 = sshll.u32 %s254_s11, 4  ;;  %s17_s10 = int_to_ptr.vmem [resolvable:$true] %s16_s10  ;;  %s274_s12 = int_to_ptr.vmem [resolvable:$true] %s25_s12 }
   0x4   :  { %s193_s15 = scalar_lea.hbm %s317_s0, 96 }
   0x5   :  { %p194_p0 = scmp.ne.s32.totalorder %s317_s0, %s193_s15  ;;  %p197_p1 = scmp.lt.u32.totalorder %s193_s15, %s317_s0 }
   0x7   :  { %p199_p2 = pnand %p197_p1, %p194_p0 }
   0x9   :  { %202 = shalt.err (!%p199_p2)
}
   0xa   :  { %s203_s20 = scalar_lea.vmem %s17_s10, 96  ;;  %p208_p4 = scmp.lt.s32.totalorder %s17_s10, %s17_s10 }
   0xb   :  { %p204_p3 = scmp.ne.s32.totalorder %s17_s10, %s203_s20  ;;  %p209_p5 = scmp.lt.s32.totalorder %s203_s20, %s203_s20 }
   0xd   :  { %p210_p6 = por %p209_p5, %p208_p4 }
   0xf   :  { %p211_p7 = pnand %p210_p6, %p204_p3 }
  0x11   :  { %214 = shalt.err (!%p211_p7)
}
  0x12   :  { %19 = dma.hbm_to_vmem [thread:$0]  %s317_s0, 96, %s17_s10, [#allocation4]  }
  0x13   :  { %s215_s25 = scalar_lea.hbm %s318_s1, 384 }
  0x14   :  { %p216_p8 = scmp.ne.s32.totalorder %s318_s1, %s215_s25  ;;  %p219_p9 = scmp.lt.u32.totalorder %s215_s25, %s318_s1 }
  0x16   :  { %p221_p10 = pnand %p219_p9, %p216_p8 }
  0x18   :  { %224 = shalt.err (!%p221_p10)
}
  0x19   :  { %s225_s30 = scalar_lea.vmem %s274_s12, 384  ;;  %p230_p12 = scmp.lt.s32.totalorder %s274_s12, %s274_s12 }
  0x1a   :  { %p226_p11 = scmp.ne.s32.totalorder %s274_s12, %s225_s30  ;;  %p231_p13 = scmp.lt.s32.totalorder %s225_s30, %s225_s30 }
  0x1c   :  { %p232_p0 = por %p231_p13, %p230_p12 }
  0x1e   :  { %p233_p1 = pnand %p232_p0, %p226_p11 }
  0x20   :  { %236 = shalt.err (!%p233_p1)
}
  0x21   :  { %s255_s0 = smov 192   ;;  %s256_s3 = smov 12  }
  0x22   :  { %31 = dma.hbm_to_vmem [thread:$0]  %s318_s1, 384, %s274_s12, [#allocation7], %s255_s0, %s255_s0, %s256_s3  }
  0x23   :  { %247 = dma.done.wait [#allocation4], 96  }
  0x24   :  { %248 = vsyncadd [#allocation4], 4294967200 }
  0x25   :  { %249 = dma.done.wait [#allocation7], 384  }
  0x26   :  { %250 = vsyncadd [#allocation7], 4294966912  ;;  %v60_v0 = vlaneseq  ;;  %v257_v1 = vmov 0.0   ;;  %v47_v7 = vld [vmem:[#allocation6] sm:$0xff]  ;;  %v49_v8 = vld [vmem:[#allocation6 + $0xc] sm:$0xff]  ;;  %vm141_vm0 = vcmask 1043456  }
  0x27   :  { %43 = vst [vmem:[#allocation2 + $0x8] sm:$0xf] %v257_v1  ;;  %45 = vst [vmem:[#allocation2 + $0x14] sm:$0xf] %v257_v1  ;;  %v48_v9 = vld [vmem:[#allocation6 + $0x8] sm:$0xf]  ;;  %v92_v15 = vcombine.high %v47_v7, %v47_v7  ;;  %v93_v16 = vcombine.high %v49_v8, %v49_v8 }
  0x28   :  { %v61_v2 = vshrl.u32 %v60_v0, 7  ;;  %v180_v6 = vld.sshfl [vmem:[#allocation3] sm:$0x77 pattern:$0x75316420]  ;;  %s237_s9 = scalar_lea.hbm %s319_s2, 16 }
  0x29   :  { %v59_v10 = vcombine.high %v180_v6, %v180_v6  ;;  %v50_v14 = vld [vmem:[#allocation6 + $0x14] sm:$0xf]  ;;  %p238_p2 = scmp.ne.s32.totalorder %s319_s2, %s237_s9  ;;  %p241_p3 = scmp.lt.u32.totalorder %s237_s9, %s319_s2 }
  0x2a   :  { %v62_v3 = vsub.s32 0, %v61_v2  ;;  %v66_v4 = vsub.s32 1, %v61_v2  ;;  %v70_v5 = vsub.s32 2, %v61_v2 }
  0x2b   :  { %p243_p4 = pnand %p241_p3, %p238_p2 }
  0x2c   :  { %v63_v11 = vrot.slane %v180_v6, %v62_v3  ;;  %v67_v12 = vrot.slane %v180_v6, %v66_v4  ;;  %v71_v13 = vrot.slane %v180_v6, %v70_v5  ;;  %v75_v17 = vrot.slane %v59_v10, %v62_v3 }
  0x2d   :  { %v79_v18 = vrot.slane %v59_v10, %v66_v4  ;;  %v83_v19 = vrot.slane %v59_v10, %v70_v5 }
  0x2e   :  { %v96_v20 = vsub.f32 %v63_v11, %v47_v7  ;;  %v97_v21 = vsub.f32 %v67_v12, %v92_v15  ;;  %v98_v22 = vsub.f32 %v71_v13, %v48_v9  ;;  %v99_v23 = vsub.f32 %v75_v17, %v49_v8  ;;  %v109_v27 = vld [vmem:[#allocation2 + $0x8] sm:$0xf]  ;;  %v111_v30 = vld [vmem:[#allocation2 + $0x14] sm:$0xf] }
  0x2f   :  { %v100_v24 = vsub.f32 %v79_v18, %v93_v16  ;;  %v101_v25 = vsub.f32 %v83_v19, %v50_v14 }
  0x30   :  { %v102_v26 = vand.u32 2147483647, %v96_v20  ;;  %v103_v28 = vand.u32 2147483647, %v97_v21  ;;  %v104_v29 = vand.u32 2147483647, %v98_v22 }
  0x31   :  { %v105_v31 = vand.u32 2147483647, %v99_v23  ;;  %v106_v32 = vand.u32 2147483647, %v100_v24  ;;  %v107_v33 = vand.u32 2147483647, %v101_v25 }
  0x32   :  { %v116_v34 = vcombine.low %v102_v26, %v103_v28  ;;  %v121_v35 = vadd.f32 %v109_v27, %v104_v29  ;;  %v191_v38 = vcombine.low %v103_v28, %v103_v28 }
  0x33   :  { %v117_v36 = vcombine.low %v105_v31, %v106_v32  ;;  %v123_v37 = vadd.f32 %v111_v30, %v107_v33  ;;  %v192_v42 = vcombine.low %v106_v32, %v106_v32 }
  0x34   :  { %125 = vst [vmem:[#allocation2 + $0x8] sm:$0xf] %v121_v35  ;;  %v142_v39 = vsel %vm141_vm0, %v116_v34, 0.0  ;;  %v143_v40 = vsel %vm141_vm0, %v191_v38, 0.0 }
  0x35   :  { %127 = vst [vmem:[#allocation2 + $0x14] sm:$0xf] %v123_v37  ;;  %v144_v41 = vadd.f32 %v143_v40, %v142_v39  ;;  %v147_v45 = vsel %vm141_vm0, %v117_v36, 0.0  ;;  %v149_v48 = vsel %vm141_vm0, %v192_v42, 0.0 }
  0x3b   :  { %v132_v43 = vld [vmem:[#allocation2 + $0x8] sm:$0xf] }
  0x3c   :  { %v145_v44 = vsel %vm141_vm0, %v132_v43, 0.0  ;;  %v134_v46 = vld [vmem:[#allocation2 + $0x14] sm:$0xf] }
  0x3d   :  { %v146_v47 = vadd.f32 %v145_v44, %v144_v41  ;;  %v151_v50 = vsel %vm141_vm0, %v134_v46, 0.0 }
  0x3f   :  { %v148_v49 = vadd.f32 %v147_v45, %v146_v47 }
  0x41   :  { %v150_v51 = vadd.f32 %v149_v48, %v148_v49 }
  0x43   :  { %v152_v52 = vadd.f32 %v151_v50, %v150_v51 }
  0x45   :  { %153 = vadd.xlane.f32.xlu0 %v152_v52 }
  0xd2   :  { %v154_v53 = vpop.xlane.xlu0 %153 }
  0xd3   :  { %v155_v54 = vrot.slane %v154_v53, 4 }
  0xd5   :  { %v156_v55 = vadd.f32 %v155_v54, %v154_v53 }
  0xd7   :  { %v157_v56 = vrot.slane %v156_v55, 2 }
  0xd9   :  { %v158_v57 = vadd.f32 %v157_v56, %v156_v55 }
  0xdb   :  { %v159_v58 = vrot.slane %v158_v57, 1 }
  0xdd   :  { %v160_v59 = vadd.f32 %v159_v58, %v158_v57 }
  0xdf   :  { %181 = vpush %v160_v59 }
 0x110   :  { %s182_s1 = spop %181 }
 0x111   :  { %s162_s6 = smul.f32 0.00032552084, %s182_s1 }
 0x113   :  { %164 = sst [smem:[#allocation8]] %s162_s6 }
 0x114   :  { %246 = shalt.err (!%p243_p4)
}
 0x115   :  { %s258_s14 = smov [#allocation8]  }
 0x116   :  { %172 = dma.smem_to_hbm %s258_s14, 16, %s319_s2, [#allocation5]  }
 0x117   :  { %251 = dma.done.wait [#allocation5], 16  }
 0x118   :  { %252 = vsyncadd [#allocation5], 4294967280 }
 0x119   :  { %176 = sfence }
 0x11a   :  { %177 = vsyncpa [#allocation4], 1 }
 0x11b   :  { %178 = vsyncpa [#allocation7], 1 }
 0x11c   :  { %179 = vsyncpa [#allocation5], 1 }

</bundles_post_ra>
